<compile_context>
chip_gen: v7x
topology: tpu7x:2x2x1
jax: 0.10.0
libtpu: 0.0.40
codegen_flags: <defaults>
</compile_context>

<pallas_src>
import functools
import math

import jax
import jax.numpy as jnp
from jax import lax
from jax.experimental import pallas as pl
from jax.experimental.pallas import tpu as pltpu


_INV_SQRT_2 = 1.0 / math.sqrt(2.0)
_VMEM_BUDGET = 24 * 1024 * 1024   # sized against v7x (64 MiB physical / 32 MiB scoped)


def _gelu(x):
    # PyTorch F.gelu default: exact erf GELU.  On TPU erf lowers to a VALU polynomial
    # (the tanh approximation would land on the single EUP), so exact erf is both the
    # correct numerics and the cheaper slot choice.
    return 0.5 * x * (1.0 + lax.erf(x * _INV_SQRT_2))


def _critic_kernel(x_ref, w1_ref, b1_ref, w2_ref, b2_ref, w3_ref, b3_ref, v_ref,
                   *, n_agents):
    # Block shapes (agent axis folded into the block, N tiled on the grid):
    #   x:  (A, D, TN)   w1: (A, H, D)   b1: (A, H, 1)
    #   w2: (A, H, H)    b2: (A, H, 1)   w3: (A, H, 1)   b3: SMEM (A,)
    #   v:  (A, 1, TN)
    # A is small (3-10): static unrolled loop; weights are VMEM resident across all
    # N tiles because their index_maps ignore the grid index.
    for a in range(n_agents):
        x = x_ref[a]                                                      # (D, TN)
        h = jnp.dot(w1_ref[a], x, preferred_element_type=jnp.float32) + b1_ref[a]
        h = _gelu(h)
        h = jnp.dot(w2_ref[a], h, preferred_element_type=jnp.float32) + b2_ref[a]
        h = _gelu(h)
        # (H -> 1) head: VPU broadcast-multiply + sublane (XLU) reduction keeps the
        # result lane-dense and off the MXU; b3 is a scalar read from SMEM.
        v = jnp.sum(w3_ref[a] * h, axis=0, keepdims=True) + b3_ref[a]
        v_ref[a] = v.astype(v_ref.dtype)


def _round_up(v, m):
    return ((v + m - 1) // m) * m


def _round_down(v, m):
    return (v // m) * m


def basic_distributed_critic_forward(obs, params, *, tile_n=16384,
                                     use_bf16_inputs=False):
    """obs: (bs, max_t, n_agents, obs_dim) float32.
    params (PyTorch nn.Linear orientation, stacked per agent):
        w1 (A, H, D), b1 (A, H, 1), w2 (A, H, H), b2 (A, H, 1),
        w3 (A, H, 1)  [= fc3.weight.T], b3 (A,)
    returns v: (bs, max_t, n_agents, 1) float32
    """
    bs, max_t, n_agents, obs_dim = obs.shape
    hidden = params["w1"].shape[1]
    N = bs * max_t

    w1, b1 = params["w1"], params["b1"]
    w2, b2 = params["w2"], params["b2"]
    w3, b3 = params["w3"], params["b3"]
    if use_bf16_inputs:
        # Cast BEFORE the transpose/pad so the one XLA transpose and the kernel x DMA
        # move half the bytes; the MXU still accumulates in f32.  Opt-in (changes numerics).
        obs = obs.astype(jnp.bfloat16)
        w1 = w1.astype(jnp.bfloat16)

    # Feature-major: (bs, max_t, A, D) -> (A, D, N); batch index n = b*max_t + t,
    # so the big N axis sits on the 128-lane dim for every activation and store.
    x = jnp.transpose(obs, (2, 3, 0, 1)).reshape(n_agents, obs_dim, N)

    # ---- N-tile sizing --------------------------------------------------------------
    x_item = x.dtype.itemsize
    # VMEM cost per unit of tn: streamed x-in + v-out blocks (double-buffered) ...
    stream_per_tn = 2 * n_agents * (obs_dim * x_item + 1 * 4)
    # ... plus in-kernel (H, tn)-sized temporaries, with a 2x safety margin.
    interm_per_tn = 2 * (obs_dim * x_item + 2 * hidden * 4)
    weight_bytes = 2 * int(sum(int(p.size) * p.dtype.itemsize
                               for p in (w1, b1, w2, b2, w3)))

    n128 = _round_up(N, 128)
    tn = max(128, _round_down(int(tile_n), 128))
    tn = min(tn, n128)
    # v7x megacore: keep >= 2 N tiles so the parallel grid axis can split across both
    # TensorCores (harmless on single-core v5e/v6e: one extra grid step).
    if n128 >= 2 * 128:
        tn = min(tn, max(128, _round_down(n128 // 2, 128)))
    # Cap tn so the whole footprint stays inside the v7x-safe VMEM budget.
    max_tn_by_vmem = max(128, _round_down(
        (_VMEM_BUDGET - weight_bytes) // (stream_per_tn + interm_per_tn), 128))
    tn = min(tn, max_tn_by_vmem)

    n_pad = _round_up(N, tn)
    if n_pad != N:
        x = jnp.pad(x, ((0, 0), (0, 0), (0, n_pad - N)))

    vmem_bytes = (stream_per_tn + interm_per_tn) * tn + weight_bytes
    assert vmem_bytes <= _VMEM_BUDGET, (vmem_bytes, _VMEM_BUDGET)

    grid = (n_pad // tn,)
    w_map = lambda n: (0, 0, 0)          # all-agent weights resident across every N tile

    flops = 2 * n_agents * n_pad * (obs_dim * hidden + hidden * hidden + hidden)
    bytes_accessed = (
        int(x.size) * x.dtype.itemsize
        + sum(int(p.size) * p.dtype.itemsize for p in (w1, b1, w2, b2, w3, b3))
        + n_agents * n_pad * 4)

    v = pl.pallas_call(
        functools.partial(_critic_kernel, n_agents=n_agents),
        out_shape=jax.ShapeDtypeStruct((n_agents, 1, n_pad), jnp.float32),
        grid_spec=pltpu.PrefetchScalarGridSpec(
            num_scalar_prefetch=0,
            grid=grid,
            in_specs=[
                pl.BlockSpec((n_agents, obs_dim, tn), lambda n: (0, 0, n)),   # x
                pl.BlockSpec((n_agents, hidden, obs_dim), w_map),             # W1 (out,in)
                pl.BlockSpec((n_agents, hidden, 1), w_map),                   # b1
                pl.BlockSpec((n_agents, hidden, hidden), w_map),              # W2
                pl.BlockSpec((n_agents, hidden, 1), w_map),                   # b2
                pl.BlockSpec((n_agents, hidden, 1), w_map),                   # w3 column
                pl.BlockSpec(memory_space=pltpu.MemorySpace.SMEM),            # b3 scalars
            ],
            out_specs=pl.BlockSpec((n_agents, 1, tn), lambda n: (0, 0, n)),
        ),
        compiler_params=pltpu.CompilerParams(
            dimension_semantics=("parallel",),
            vmem_limit_bytes=int(min(max(2 * vmem_bytes, 16 * 1024 * 1024),
                                     32 * 1024 * 1024)),
        ),
        cost_estimate=pl.CostEstimate(
            flops=flops,
            transcendentals=0,    # exact-erf GELU lowers to a VALU polynomial, not EUP
            bytes_accessed=bytes_accessed),
    )(x, w1, b1, w2, b2, w3, b3)

    # (A, 1, N_pad) -> (bs, max_t, A, 1)   (equivalent to th.stack(res, dim=2))
    v = v[:, 0, :N]                                     # (A, N)
    v = jnp.transpose(v, (1, 0)).reshape(bs, max_t, n_agents, 1)
    return v


def init_params(key, n_agents, obs_dim, hidden_dim):
    """PyTorch-Linear-style uniform init, stacked per agent, (out, in) orientation."""
    ks = jax.random.split(key, 6)

    def uni(k, shape, fan_in):
        bound = 1.0 / math.sqrt(fan_in)
        return jax.random.uniform(k, shape, jnp.float32, -bound, bound)

    return {
        "w1": uni(ks[0], (n_agents, hidden_dim, obs_dim), obs_dim),
        "b1": uni(ks[1], (n_agents, hidden_dim, 1), obs_dim),
        "w2": uni(ks[2], (n_agents, hidden_dim, hidden_dim), hidden_dim),
        "b2": uni(ks[3], (n_agents, hidden_dim, 1), hidden_dim),
        "w3": uni(ks[4], (n_agents, hidden_dim, 1), hidden_dim),   # fc3.weight.T
        "b3": uni(ks[5], (n_agents,), hidden_dim),
    }


def reference_forward(obs, params):
    """Pure-JAX reference matching the PyTorch module semantics (exact erf GELU)."""
    bs, max_t, n_agents, obs_dim = obs.shape
    outs = []
    for a in range(n_agents):
        xa = obs[:, :, a, :]                                   # (bs, max_t, D)
        h = _gelu(xa @ params["w1"][a].T + params["b1"][a][:, 0])
        h = _gelu(h @ params["w2"][a].T + params["b2"][a][:, 0])
        v = h @ params["w3"][a] + params["b3"][a]              # (bs, max_t, 1)
        outs.append(v)
    return jnp.stack(outs, axis=2)                             # (bs, max_t, A, 1)


if __name__ == "__main__":
    bs, max_t, n_agents = 2, 8, 3
    obs_dim = 16           # scheme['obs']['vshape']
    hidden_dim = 32        # args.critic_hidden_dim

    key = jax.random.PRNGKey(0)
    k_obs, k_par, k_obs2 = jax.random.split(key, 3)

    params = init_params(k_par, n_agents, obs_dim, hidden_dim)

    # Small shape: single N tile (N=16 padded to 128).
    obs = jax.random.normal(k_obs, (bs, max_t, n_agents, obs_dim), jnp.float32)
    v = jax.block_until_ready(basic_distributed_critic_forward(obs, params))
    v_ref = reference_forward(obs, params)
    assert v.shape == (bs, max_t, n_agents, 1)
    assert jnp.allclose(v, v_ref, atol=1e-4, rtol=1e-4)

    # Larger batch: N = 640 -> megacore cap gives tn=256, three tiles + tail padding.
    bs2, max_t2 = 4, 160
    obs2 = jax.random.normal(k_obs2, (bs2, max_t2, n_agents, obs_dim), jnp.float32)
    v2 = jax.block_until_ready(basic_distributed_critic_forward(obs2, params))
    v2_ref = reference_forward(obs2, params)
    assert v2.shape == (bs2, max_t2, n_agents, 1)
    assert jnp.allclose(v2, v2_ref, atol=1e-4, rtol=1e-4)

    # bf16 x/W1 fast path (cast before the transpose): f32 accumulation, looser tolerance.
    v3 = jax.block_until_ready(
        basic_distributed_critic_forward(obs2, params, use_bf16_inputs=True))
    assert jnp.allclose(v3, v2_ref, atol=5e-2, rtol=5e-2)

    print("KERNEL_OK")
</pallas_src>

<mosaic_0001>
module attributes {stable_mosaic.version = 11 : i64} {
  func.func @_critic_kernel(%arg0: i32, %arg1: memref<3x16x128xf32, #tpu.memory_space<vmem>>, %arg2: memref<3x32x16xf32, #tpu.memory_space<vmem>>, %arg3: memref<3x32x1xf32, #tpu.memory_space<vmem>>, %arg4: memref<3x32x32xf32, #tpu.memory_space<vmem>>, %arg5: memref<3x32x1xf32, #tpu.memory_space<vmem>>, %arg6: memref<3x32x1xf32, #tpu.memory_space<vmem>>, %arg7: memref<3xf32, #tpu.memory_space<smem>>, %arg8: memref<3x1x128xf32, #tpu.memory_space<vmem>>) attributes {dimension_semantics = [#tpu.dimension_semantics<parallel>], iteration_bounds = array<i64: 1>, scalar_prefetch = 0 : i64, scratch_operands = 0 : i64, tpu.core_type = #tpu.core_type<tc>, window_params = [{transform_indices = @transform_0, window_bounds = array<i64: 3, 16, 128>}, {pipeline_mode = #tpu.pipeline_mode<synchronous>, transform_indices = @transform_1, window_bounds = array<i64: 3, 32, 16>}, {pipeline_mode = #tpu.pipeline_mode<synchronous>, transform_indices = @transform_2, window_bounds = array<i64: 3, 32, 1>}, {pipeline_mode = #tpu.pipeline_mode<synchronous>, transform_indices = @transform_3, window_bounds = array<i64: 3, 32, 32>}, {pipeline_mode = #tpu.pipeline_mode<synchronous>, transform_indices = @transform_4, window_bounds = array<i64: 3, 32, 1>}, {pipeline_mode = #tpu.pipeline_mode<synchronous>, transform_indices = @transform_5, window_bounds = array<i64: 3, 32, 1>}, {transform_indices = @transform_6, window_bounds = array<i64: 3>}, {transform_indices = @transform_7, window_bounds = array<i64: 3, 1, 128>}]} {
    %c0 = arith.constant 0 : index
    %c0_0 = arith.constant 0 : index
    %c0_1 = arith.constant 0 : index
    %0 = vector.load %arg1[%c0, %c0_0, %c0_1] : memref<3x16x128xf32, #tpu.memory_space<vmem>>, vector<1x16x128xf32>
    %1 = vector.shape_cast %0 : vector<1x16x128xf32> to vector<16x128xf32>
    %c0_2 = arith.constant 0 : index
    %c0_3 = arith.constant 0 : index
    %c0_4 = arith.constant 0 : index
    %2 = vector.load %arg2[%c0_2, %c0_3, %c0_4] : memref<3x32x16xf32, #tpu.memory_space<vmem>>, vector<1x32x16xf32>
    %3 = vector.shape_cast %2 : vector<1x32x16xf32> to vector<32x16xf32>
    %cst = arith.constant dense<0.000000e+00> : vector<32x128xf32>
    %4 = tpu.matmul %3, %1, %cst {dimension_numbers = #tpu.dot_dimension_numbers<[1], [0], [0], [1], [0, 0, 1, 1], [], []>} : vector<32x16xf32>, vector<16x128xf32>, vector<32x128xf32> -> vector<32x128xf32>
    %c0_5 = arith.constant 0 : index
    %c0_6 = arith.constant 0 : index
    %c0_7 = arith.constant 0 : index
    %5 = vector.load %arg3[%c0_5, %c0_6, %c0_7] : memref<3x32x1xf32, #tpu.memory_space<vmem>>, vector<1x32x1xf32>
    %6 = vector.shape_cast %5 : vector<1x32x1xf32> to vector<32x1xf32>
    %7 = vector.broadcast %6 : vector<32x1xf32> to vector<32x128xf32>
    %8 = arith.addf %4, %7 : vector<32x128xf32>
    %cst_8 = arith.constant 5.000000e-01 : f32
    %9 = vector.broadcast %cst_8 : f32 to vector<32x128xf32>
    %10 = arith.mulf %9, %8 : vector<32x128xf32>
    %cst_9 = arith.constant 0.707106769 : f32
    %11 = vector.broadcast %cst_9 : f32 to vector<32x128xf32>
    %12 = arith.mulf %8, %11 : vector<32x128xf32>
    %13 = math.erf %12 : vector<32x128xf32>
    %cst_10 = arith.constant 1.000000e+00 : f32
    %14 = vector.broadcast %cst_10 : f32 to vector<32x128xf32>
    %15 = arith.addf %14, %13 : vector<32x128xf32>
    %16 = arith.mulf %10, %15 : vector<32x128xf32>
    %c0_11 = arith.constant 0 : index
    %c0_12 = arith.constant 0 : index
    %c0_13 = arith.constant 0 : index
    %17 = vector.load %arg4[%c0_11, %c0_12, %c0_13] : memref<3x32x32xf32, #tpu.memory_space<vmem>>, vector<1x32x32xf32>
    %18 = vector.shape_cast %17 : vector<1x32x32xf32> to vector<32x32xf32>
    %cst_14 = arith.constant dense<0.000000e+00> : vector<32x128xf32>
    %19 = tpu.matmul %18, %16, %cst_14 {dimension_numbers = #tpu.dot_dimension_numbers<[1], [0], [0], [1], [0, 0, 1, 1], [], []>} : vector<32x32xf32>, vector<32x128xf32>, vector<32x128xf32> -> vector<32x128xf32>
    %c0_15 = arith.constant 0 : index
    %c0_16 = arith.constant 0 : index
    %c0_17 = arith.constant 0 : index
    %20 = vector.load %arg5[%c0_15, %c0_16, %c0_17] : memref<3x32x1xf32, #tpu.memory_space<vmem>>, vector<1x32x1xf32>
    %21 = vector.shape_cast %20 : vector<1x32x1xf32> to vector<32x1xf32>
    %22 = vector.broadcast %21 : vector<32x1xf32> to vector<32x128xf32>
    %23 = arith.addf %19, %22 : vector<32x128xf32>
    %cst_18 = arith.constant 5.000000e-01 : f32
    %24 = vector.broadcast %cst_18 : f32 to vector<32x128xf32>
    %25 = arith.mulf %24, %23 : vector<32x128xf32>
    %cst_19 = arith.constant 0.707106769 : f32
    %26 = vector.broadcast %cst_19 : f32 to vector<32x128xf32>
    %27 = arith.mulf %23, %26 : vector<32x128xf32>
    %28 = math.erf %27 : vector<32x128xf32>
    %cst_20 = arith.constant 1.000000e+00 : f32
    %29 = vector.broadcast %cst_20 : f32 to vector<32x128xf32>
    %30 = arith.addf %29, %28 : vector<32x128xf32>
    %31 = arith.mulf %25, %30 : vector<32x128xf32>
    %c0_21 = arith.constant 0 : index
    %c0_22 = arith.constant 0 : index
    %c0_23 = arith.constant 0 : index
    %32 = vector.load %arg6[%c0_21, %c0_22, %c0_23] : memref<3x32x1xf32, #tpu.memory_space<vmem>>, vector<1x32x1xf32>
    %33 = vector.shape_cast %32 : vector<1x32x1xf32> to vector<32x1xf32>
    %34 = vector.broadcast %33 : vector<32x1xf32> to vector<32x128xf32>
    %35 = arith.mulf %34, %31 : vector<32x128xf32>
    %cst_24 = arith.constant dense<0.000000e+00> : vector<128xf32>
    %36 = vector.multi_reduction <add>, %35, %cst_24 [0] : vector<32x128xf32> to vector<128xf32>
    %37 = vector.shape_cast %36 : vector<128xf32> to vector<1x128xf32>
    %c0_25 = arith.constant 0 : index
    %38 = memref.load %arg7[%c0_25] : memref<3xf32, #tpu.memory_space<smem>>
    %39 = vector.broadcast %38 : f32 to vector<1x128xf32>
    %40 = arith.addf %37, %39 : vector<1x128xf32>
    %c0_26 = arith.constant 0 : index
    %c0_27 = arith.constant 0 : index
    %c0_28 = arith.constant 0 : index
    %41 = vector.load %arg8[%c0_26, %c0_27, %c0_28] : memref<3x1x128xf32, #tpu.memory_space<vmem>>, vector<1x1x128xf32>
    %42 = vector.shape_cast %41 : vector<1x1x128xf32> to vector<1x128xf32>
    %43 = vector.shape_cast %40 : vector<1x128xf32> to vector<1x1x128xf32>
    tpu.vector_store %arg8[%c0_26, %c0_27, %c0_28], %43 {strides = array<i32>} : memref<3x1x128xf32, #tpu.memory_space<vmem>>, vector<1x1x128xf32>,
    %c1 = arith.constant 1 : index
    %c0_29 = arith.constant 0 : index
    %c0_30 = arith.constant 0 : index
    %44 = vector.load %arg1[%c1, %c0_29, %c0_30] : memref<3x16x128xf32, #tpu.memory_space<vmem>>, vector<1x16x128xf32>
    %45 = vector.shape_cast %44 : vector<1x16x128xf32> to vector<16x128xf32>
    %c1_31 = arith.constant 1 : index
    %c0_32 = arith.constant 0 : index
    %c0_33 = arith.constant 0 : index
    %46 = vector.load %arg2[%c1_31, %c0_32, %c0_33] : memref<3x32x16xf32, #tpu.memory_space<vmem>>, vector<1x32x16xf32>
    %47 = vector.shape_cast %46 : vector<1x32x16xf32> to vector<32x16xf32>
    %cst_34 = arith.constant dense<0.000000e+00> : vector<32x128xf32>
    %48 = tpu.matmul %47, %45, %cst_34 {dimension_numbers = #tpu.dot_dimension_numbers<[1], [0], [0], [1], [0, 0, 1, 1], [], []>} : vector<32x16xf32>, vector<16x128xf32>, vector<32x128xf32> -> vector<32x128xf32>
    %c1_35 = arith.constant 1 : index
    %c0_36 = arith.constant 0 : index
    %c0_37 = arith.constant 0 : index
    %49 = vector.load %arg3[%c1_35, %c0_36, %c0_37] : memref<3x32x1xf32, #tpu.memory_space<vmem>>, vector<1x32x1xf32>
    %50 = vector.shape_cast %49 : vector<1x32x1xf32> to vector<32x1xf32>
    %51 = vector.broadcast %50 : vector<32x1xf32> to vector<32x128xf32>
    %52 = arith.addf %48, %51 : vector<32x128xf32>
    %cst_38 = arith.constant 5.000000e-01 : f32
    %53 = vector.broadcast %cst_38 : f32 to vector<32x128xf32>
    %54 = arith.mulf %53, %52 : vector<32x128xf32>
    %cst_39 = arith.constant 0.707106769 : f32
    %55 = vector.broadcast %cst_39 : f32 to vector<32x128xf32>
    %56 = arith.mulf %52, %55 : vector<32x128xf32>
    %57 = math.erf %56 : vector<32x128xf32>
    %cst_40 = arith.constant 1.000000e+00 : f32
    %58 = vector.broadcast %cst_40 : f32 to vector<32x128xf32>
    %59 = arith.addf %58, %57 : vector<32x128xf32>
    %60 = arith.mulf %54, %59 : vector<32x128xf32>
    %c1_41 = arith.constant 1 : index
    %c0_42 = arith.constant 0 : index
    %c0_43 = arith.constant 0 : index
    %61 = vector.load %arg4[%c1_41, %c0_42, %c0_43] : memref<3x32x32xf32, #tpu.memory_space<vmem>>, vector<1x32x32xf32>
    %62 = vector.shape_cast %61 : vector<1x32x32xf32> to vector<32x32xf32>
    %cst_44 = arith.constant dense<0.000000e+00> : vector<32x128xf32>
    %63 = tpu.matmul %62, %60, %cst_44 {dimension_numbers = #tpu.dot_dimension_numbers<[1], [0], [0], [1], [0, 0, 1, 1], [], []>} : vector<32x32xf32>, vector<32x128xf32>, vector<32x128xf32> -> vector<32x128xf32>
    %c1_45 = arith.constant 1 : index
    %c0_46 = arith.constant 0 : index
    %c0_47 = arith.constant 0 : index
    %64 = vector.load %arg5[%c1_45, %c0_46, %c0_47] : memref<3x32x1xf32, #tpu.memory_space<vmem>>, vector<1x32x1xf32>
    %65 = vector.shape_cast %64 : vector<1x32x1xf32> to vector<32x1xf32>
    %66 = vector.broadcast %65 : vector<32x1xf32> to vector<32x128xf32>
    %67 = arith.addf %63, %66 : vector<32x128xf32>
    %cst_48 = arith.constant 5.000000e-01 : f32
    %68 = vector.broadcast %cst_48 : f32 to vector<32x128xf32>
    %69 = arith.mulf %68, %67 : vector<32x128xf32>
    %cst_49 = arith.constant 0.707106769 : f32
    %70 = vector.broadcast %cst_49 : f32 to vector<32x128xf32>
    %71 = arith.mulf %67, %70 : vector<32x128xf32>
    %72 = math.erf %71 : vector<32x128xf32>
    %cst_50 = arith.constant 1.000000e+00 : f32
    %73 = vector.broadcast %cst_50 : f32 to vector<32x128xf32>
    %74 = arith.addf %73, %72 : vector<32x128xf32>
    %75 = arith.mulf %69, %74 : vector<32x128xf32>
    %c1_51 = arith.constant 1 : index
    %c0_52 = arith.constant 0 : index
    %c0_53 = arith.constant 0 : index
    %76 = vector.load %arg6[%c1_51, %c0_52, %c0_53] : memref<3x32x1xf32, #tpu.memory_space<vmem>>, vector<1x32x1xf32>
    %77 = vector.shape_cast %76 : vector<1x32x1xf32> to vector<32x1xf32>
    %78 = vector.broadcast %77 : vector<32x1xf32> to vector<32x128xf32>
    %79 = arith.mulf %78, %75 : vector<32x128xf32>
    %cst_54 = arith.constant dense<0.000000e+00> : vector<128xf32>
    %80 = vector.multi_reduction <add>, %79, %cst_54 [0] : vector<32x128xf32> to vector<128xf32>
    %81 = vector.shape_cast %80 : vector<128xf32> to vector<1x128xf32>
    %c1_55 = arith.constant 1 : index
    %82 = memref.load %arg7[%c1_55] : memref<3xf32, #tpu.memory_space<smem>>
    %83 = vector.broadcast %82 : f32 to vector<1x128xf32>
    %84 = arith.addf %81, %83 : vector<1x128xf32>
    %c1_56 = arith.constant 1 : index
    %c0_57 = arith.constant 0 : index
    %c0_58 = arith.constant 0 : index
    %85 = vector.load %arg8[%c1_56, %c0_57, %c0_58] : memref<3x1x128xf32, #tpu.memory_space<vmem>>, vector<1x1x128xf32>
    %86 = vector.shape_cast %85 : vector<1x1x128xf32> to vector<1x128xf32>
    %87 = vector.shape_cast %84 : vector<1x128xf32> to vector<1x1x128xf32>
    tpu.vector_store %arg8[%c1_56, %c0_57, %c0_58], %87 {strides = array<i32>} : memref<3x1x128xf32, #tpu.memory_space<vmem>>, vector<1x1x128xf32>,
    %c2 = arith.constant 2 : index
    %c0_59 = arith.constant 0 : index
    %c0_60 = arith.constant 0 : index
    %88 = vector.load %arg1[%c2, %c0_59, %c0_60] : memref<3x16x128xf32, #tpu.memory_space<vmem>>, vector<1x16x128xf32>
    %89 = vector.shape_cast %88 : vector<1x16x128xf32> to vector<16x128xf32>
    %c2_61 = arith.constant 2 : index
    %c0_62 = arith.constant 0 : index
    %c0_63 = arith.constant 0 : index
    %90 = vector.load %arg2[%c2_61, %c0_62, %c0_63] : memref<3x32x16xf32, #tpu.memory_space<vmem>>, vector<1x32x16xf32>
    %91 = vector.shape_cast %90 : vector<1x32x16xf32> to vector<32x16xf32>
    %cst_64 = arith.constant dense<0.000000e+00> : vector<32x128xf32>
    %92 = tpu.matmul %91, %89, %cst_64 {dimension_numbers = #tpu.dot_dimension_numbers<[1], [0], [0], [1], [0, 0, 1, 1], [], []>} : vector<32x16xf32>, vector<16x128xf32>, vector<32x128xf32> -> vector<32x128xf32>
    %c2_65 = arith.constant 2 : index
    %c0_66 = arith.constant 0 : index
    %c0_67 = arith.constant 0 : index
    %93 = vector.load %arg3[%c2_65, %c0_66, %c0_67] : memref<3x32x1xf32, #tpu.memory_space<vmem>>, vector<1x32x1xf32>
    %94 = vector.shape_cast %93 : vector<1x32x1xf32> to vector<32x1xf32>
    %95 = vector.broadcast %94 : vector<32x1xf32> to vector<32x128xf32>
    %96 = arith.addf %92, %95 : vector<32x128xf32>
    %cst_68 = arith.constant 5.000000e-01 : f32
    %97 = vector.broadcast %cst_68 : f32 to vector<32x128xf32>
    %98 = arith.mulf %97, %96 : vector<32x128xf32>
    %cst_69 = arith.constant 0.707106769 : f32
    %99 = vector.broadcast %cst_69 : f32 to vector<32x128xf32>
    %100 = arith.mulf %96, %99 : vector<32x128xf32>
    %101 = math.erf %100 : vector<32x128xf32>
    %cst_70 = arith.constant 1.000000e+00 : f32
    %102 = vector.broadcast %cst_70 : f32 to vector<32x128xf32>
    %103 = arith.addf %102, %101 : vector<32x128xf32>
    %104 = arith.mulf %98, %103 : vector<32x128xf32>
    %c2_71 = arith.constant 2 : index
    %c0_72 = arith.constant 0 : index
    %c0_73 = arith.constant 0 : index
    %105 = vector.load %arg4[%c2_71, %c0_72, %c0_73] : memref<3x32x32xf32, #tpu.memory_space<vmem>>, vector<1x32x32xf32>
    %106 = vector.shape_cast %105 : vector<1x32x32xf32> to vector<32x32xf32>
    %cst_74 = arith.constant dense<0.000000e+00> : vector<32x128xf32>
    %107 = tpu.matmul %106, %104, %cst_74 {dimension_numbers = #tpu.dot_dimension_numbers<[1], [0], [0], [1], [0, 0, 1, 1], [], []>} : vector<32x32xf32>, vector<32x128xf32>, vector<32x128xf32> -> vector<32x128xf32>
    %c2_75 = arith.constant 2 : index
    %c0_76 = arith.constant 0 : index
    %c0_77 = arith.constant 0 : index
    %108 = vector.load %arg5[%c2_75, %c0_76, %c0_77] : memref<3x32x1xf32, #tpu.memory_space<vmem>>, vector<1x32x1xf32>
    %109 = vector.shape_cast %108 : vector<1x32x1xf32> to vector<32x1xf32>
    %110 = vector.broadcast %109 : vector<32x1xf32> to vector<32x128xf32>
    %111 = arith.addf %107, %110 : vector<32x128xf32>
    %cst_78 = arith.constant 5.000000e-01 : f32
    %112 = vector.broadcast %cst_78 : f32 to vector<32x128xf32>
    %113 = arith.mulf %112, %111 : vector<32x128xf32>
    %cst_79 = arith.constant 0.707106769 : f32
    %114 = vector.broadcast %cst_79 : f32 to vector<32x128xf32>
    %115 = arith.mulf %111, %114 : vector<32x128xf32>
    %116 = math.erf %115 : vector<32x128xf32>
    %cst_80 = arith.constant 1.000000e+00 : f32
    %117 = vector.broadcast %cst_80 : f32 to vector<32x128xf32>
    %118 = arith.addf %117, %116 : vector<32x128xf32>
    %119 = arith.mulf %113, %118 : vector<32x128xf32>
    %c2_81 = arith.constant 2 : index
    %c0_82 = arith.constant 0 : index
    %c0_83 = arith.constant 0 : index
    %120 = vector.load %arg6[%c2_81, %c0_82, %c0_83] : memref<3x32x1xf32, #tpu.memory_space<vmem>>, vector<1x32x1xf32>
    %121 = vector.shape_cast %120 : vector<1x32x1xf32> to vector<32x1xf32>
    %122 = vector.broadcast %121 : vector<32x1xf32> to vector<32x128xf32>
    %123 = arith.mulf %122, %119 : vector<32x128xf32>
    %cst_84 = arith.constant dense<0.000000e+00> : vector<128xf32>
    %124 = vector.multi_reduction <add>, %123, %cst_84 [0] : vector<32x128xf32> to vector<128xf32>
    %125 = vector.shape_cast %124 : vector<128xf32> to vector<1x128xf32>
    %c2_85 = arith.constant 2 : index
    %126 = memref.load %arg7[%c2_85] : memref<3xf32, #tpu.memory_space<smem>>
    %127 = vector.broadcast %126 : f32 to vector<1x128xf32>
    %128 = arith.addf %125, %127 : vector<1x128xf32>
    %c2_86 = arith.constant 2 : index
    %c0_87 = arith.constant 0 : index
    %c0_88 = arith.constant 0 : index
    %129 = vector.load %arg8[%c2_86, %c0_87, %c0_88] : memref<3x1x128xf32, #tpu.memory_space<vmem>>, vector<1x1x128xf32>
    %130 = vector.shape_cast %129 : vector<1x1x128xf32> to vector<1x128xf32>
    %131 = vector.shape_cast %128 : vector<1x128xf32> to vector<1x1x128xf32>
    tpu.vector_store %arg8[%c2_86, %c0_87, %c0_88], %131 {strides = array<i32>} : memref<3x1x128xf32, #tpu.memory_space<vmem>>, vector<1x1x128xf32>,
    return
  }
  func.func @transform_0(%arg0: i32) -> (i32, i32, i32) {
    %c0_i32 = arith.constant 0 : i32
    %c0_i32_0 = arith.constant 0 : i32
    %c0_i32_1 = arith.constant 0 : i32
    return %c0_i32, %c0_i32_0, %arg0 : i32, i32, i32
  }
  func.func @transform_1(%arg0: i32) -> (i32, i32, i32) {
    %c0_i32 = arith.constant 0 : i32
    %c0_i32_0 = arith.constant 0 : i32
    %c0_i32_1 = arith.constant 0 : i32
    %c0_i32_2 = arith.constant 0 : i32
    return %c0_i32, %c0_i32_0, %c0_i32_1 : i32, i32, i32
  }
  func.func @transform_2(%arg0: i32) -> (i32, i32, i32) {
    %c0_i32 = arith.constant 0 : i32
    %c0_i32_0 = arith.constant 0 : i32
    %c0_i32_1 = arith.constant 0 : i32
    %c0_i32_2 = arith.constant 0 : i32
    return %c0_i32, %c0_i32_0, %c0_i32_1 : i32, i32, i32
  }
  func.func @transform_3(%arg0: i32) -> (i32, i32, i32) {
    %c0_i32 = arith.constant 0 : i32
    %c0_i32_0 = arith.constant 0 : i32
    %c0_i32_1 = arith.constant 0 : i32
    %c0_i32_2 = arith.constant 0 : i32
    return %c0_i32, %c0_i32_0, %c0_i32_1 : i32, i32, i32
  }
  func.func @transform_4(%arg0: i32) -> (i32, i32, i32) {
    %c0_i32 = arith.constant 0 : i32
    %c0_i32_0 = arith.constant 0 : i32
    %c0_i32_1 = arith.constant 0 : i32
    %c0_i32_2 = arith.constant 0 : i32
    return %c0_i32, %c0_i32_0, %c0_i32_1 : i32, i32, i32
  }
  func.func @transform_5(%arg0: i32) -> (i32, i32, i32) {
    %c0_i32 = arith.constant 0 : i32
    %c0_i32_0 = arith.constant 0 : i32
    %c0_i32_1 = arith.constant 0 : i32
    %c0_i32_2 = arith.constant 0 : i32
    return %c0_i32, %c0_i32_0, %c0_i32_1 : i32, i32, i32
  }
  func.func @transform_6(%arg0: i32) -> i32 {
    %c0_i32 = arith.constant 0 : i32
    %c0_i32_0 = arith.constant 0 : i32
    return %c0_i32 : i32
  }
  func.func @transform_7(%arg0: i32) -> (i32, i32, i32) {
    %c0_i32 = arith.constant 0 : i32
    %c0_i32_0 = arith.constant 0 : i32
    %c0_i32_1 = arith.constant 0 : i32
    return %c0_i32, %c0_i32_0, %arg0 : i32, i32, i32
  }
}

</mosaic_0001>

<bundles_post_ra>
// kernel: tpu_custom_call.1
= control target key start
LH: loop header
LB: loop body
LE: loop exit
PB: predicated region body
PF: predicated region fallthrough
CT: control target
= control target key end

     0   :  { %12 = vsyncpa [#allocation4], 0  ;;  %s1696_s0 = inlined_call_operand.vmem [shape: f32[3,16,128], index: 0, kind: input, shape index: {}]   ;;  %s1697_s1 = inlined_call_operand.vmem [shape: f32[3,32,16], index: 1, kind: input, shape index: {}]   ;;  %s1698_s2 = inlined_call_operand.vmem [shape: f32[3,32,1], index: 2, kind: input, shape index: {}]   ;;  %s1699_s3 = inlined_call_operand.vmem [shape: f32[3,32,32], index: 3, kind: input, shape index: {}]   ;;  %s1700_s4 = inlined_call_operand.vmem [shape: f32[3,32,1], index: 4, kind: input, shape index: {}]   ;;  %s1701_s5 = inlined_call_operand.vmem [shape: f32[3,32,1], index: 5, kind: input, shape index: {}]   ;;  %s1702_s6 = inlined_call_operand.vmem [shape: f32[3], index: 6, kind: input, shape index: {}]   ;;  %s1703_s7 = inlined_call_operand.hbm [shape: f32[3,1,128], index: 7, kind: output, shape index: {}]  }
   0x1   :  { %13 = vsyncpa [#allocation3], 0  ;;  %s32_s26 = sshll.u32 %s1702_s6, 4  ;;  %s33_s26 = int_to_ptr.vmem [resolvable:$true] %s32_s26 }
   0x2   :  { %s1347_s27 = scalar_lea.vmem %s33_s26, 16  ;;  %p1352_p1 = scmp.lt.s32.totalorder %s33_s26, %s33_s26 }
   0x3   :  { %p1348_p0 = scmp.ne.s32.totalorder %s33_s26, %s1347_s27  ;;  %p1353_p2 = scmp.lt.s32.totalorder %s1347_s27, %s1347_s27 }
   0x5   :  { %p1354_p3 = por %p1353_p2, %p1352_p1 }
   0x7   :  { %p1355_p4 = pnand %p1354_p3, %p1348_p0 }
   0x9   :  { %1358 = shalt.err (!%p1355_p4)
}
   0xa   :  { %s1385_s28 = smov [#allocation2]  }
   0xb   :  { %35 = dma.vmem_to_smem %s33_s26, 16, %s1385_s28, [#allocation4]  }
   0xc   :  { %1381 = dma.done.wait [#allocation4], 16  }
   0xd   :  { %1382 = vsyncadd [#allocation4], 4294967280 }
   0xe   :  { %39 = sfence }
   0xf   :  { %v40_v0 = vld [vmem:[%s1696_s0] sm:$0xff]  ;;  %v41_v1 = vld [vmem:[%s1696_s0 + $0x8] sm:$0xff]  ;;  %vm70_vm0 = vcmask 130048   ;;  %v1080_v4 = vld [vmem:[%s1696_s0 + $0x10] sm:$0xff]  ;;  %v1386_v6 = vmov 0   ;;  %vm216_vm1 = vcmask 261120  }
  0x10   :  { %v42_v2 = vld [vmem:[%s1697_s1] sm:$0xff]  ;;  %v1256_v3 = vpack.c.bf16 %v41_v1, %v40_v0  ;;  %v1081_v5 = vld [vmem:[%s1696_s0 + $0x18] sm:$0xff]  ;;  %1297 = vset.pattern.permute.xlu0 %v1386_v6  ;;  %1298 = vset.pattern.permute.xlu1 %v1386_v6  ;;  %v1112_v9 = vld [vmem:[%s1696_s0 + $0x28] sm:$0xff]  ;;  %s1110_s27 = sld [smem:[#allocation2 + $0x1]]  ;;  %s1141_s28 = sld [smem:[#allocation2 + $0x2]] }
  0x11   :  { %1188 = vmatprep.mubr.msk.f32.mxu0 %vm70_vm0, %v42_v2  ;;  %v1268_v7 = vpack.c.bf16 %v1081_v5, %v1080_v4  ;;  %v1111_v8 = vld [vmem:[%s1696_s0 + $0x20] sm:$0xff]  ;;  %v43_v10 = vld [vmem:[%s1697_s1 + $0x8] sm:$0xff]  ;;  %v44_v12 = vld [vmem:[%s1697_s1 + $0x10] sm:$0xff]  ;;  %s1387_s29 = smov [#allocation5]  }
  0x12   :  { %1257 = vmatprep.subr.bf16.mxu0 %v1256_v3  ;;  %v46_v11 = vld [vmem:[%s1698_s2] sm:$0xff]  ;;  %v1280_v13 = vpack.c.bf16 %v1112_v9, %v1111_v8  ;;  %v48_v14 = vld [vmem:[%s1698_s2 + $0x10] sm:$0xff]  ;;  %v47_v15 = vld [vmem:[%s1698_s2 + $0x8] sm:$0xff]  ;;  %s1060_s30 = sshll.u32 %s1387_s29, 4  ;;  %s1061_s30 = int_to_ptr.vmem [resolvable:$true] %s1060_s30 }
  0x13   :  { %1259 = vmatpush3.bf16.msra.mxu0 %v1256_v3  ;;  %52 = vperm.xlu0 %1297, %v46_v11   ;;  %v49_v16 = vld [vmem:[%s1698_s2 + $0x18] sm:$0xff]  ;;  %v1082_v18 = vld [vmem:[%s1697_s1 + $0x20] sm:$0xff]  ;;  %v1087_v20 = vld [vmem:[%s1698_s2 + $0x28] sm:$0xff]  ;;  %s1359_s8 = scalar_lea.vmem %s1061_s30, 48  ;;  %s1363_s9 = scalar_lea.vmem %s1061_s30, 64 }
  0x14   :  { %1269 = vmatprep.subr.bf16.mxu0 %v1268_v7  ;;  %62 = vperm.xlu1 %1298, %v48_v14   ;;  %v45_v17 = vld [vmem:[%s1697_s1 + $0x18] sm:$0xff]  ;;  %v1086_v19 = vld [vmem:[%s1698_s2 + $0x20] sm:$0xff]  ;;  %v1083_v21 = vld [vmem:[%s1697_s1 + $0x28] sm:$0xff]  ;;  %p1360_p5 = scmp.ne.s32.totalorder %s1061_s30, %s1359_s8  ;;  %p1364_p6 = scmp.lt.s32.totalorder %s1061_s30, %s1061_s30 }
  0x15   :  { %v1084_v22 = vld [vmem:[%s1697_s1 + $0x30] sm:$0xff]  ;;  %v1089_v24 = vld [vmem:[%s1698_s2 + $0x38] sm:$0xff]  ;;  %v1113_v26 = vld [vmem:[%s1697_s1 + $0x40] sm:$0xff]  ;;  %p1365_p7 = scmp.lt.s32.totalorder %s1363_s9, %s1359_s8 }
  0x16   :  { %1189 = vmatmul.mubr.msk.f32.vlgmr.msra.gmra.mrb[0].mxu0 %vm70_vm0, %v43_v10  ;;  %v1088_v23 = vld [vmem:[%s1698_s2 + $0x30] sm:$0xff]  ;;  %v1085_v25 = vld [vmem:[%s1697_s1 + $0x38] sm:$0xff]  ;;  %v1117_v27 = vld [vmem:[%s1698_s2 + $0x40] sm:$0xff] }
  0x17   :  { %1271 = vmatpush3.bf16.msra.mxu0 %v1268_v7  ;;  %1191 = vmatprep.mubr.msk.f32.mxu0 %vm70_vm0, %v44_v12  ;;  %v1118_v28 = vld [vmem:[%s1698_s2 + $0x48] sm:$0xff]  ;;  %v1115_v30 = vld [vmem:[%s1697_s1 + $0x50] sm:$0xff]  ;;  %v1120_v32 = vld [vmem:[%s1698_s2 + $0x58] sm:$0xff]  ;;  %p1366_p8 = por %p1365_p7, %p1364_p6 }
  0x18   :  { %1281 = vmatprep.subr.bf16.mxu0 %v1280_v13  ;;  %57 = vperm.xlu0 %1297, %v47_v15   ;;  %v1114_v29 = vld [vmem:[%s1697_s1 + $0x48] sm:$0xff]  ;;  %v1119_v31 = vld [vmem:[%s1698_s2 + $0x50] sm:$0xff]  ;;  %v1116_v33 = vld [vmem:[%s1697_s1 + $0x58] sm:$0xff] }
  0x19   :  { %67 = vperm.xlu1 %1298, %v49_v16   ;;  %v192_v34 = vld [vmem:[%s1700_s4] sm:$0xff]  ;;  %v193_v35 = vld [vmem:[%s1700_s4 + $0x8] sm:$0xff]  ;;  %v194_v40 = vld [vmem:[%s1700_s4 + $0x10] sm:$0xff]  ;;  %p1367_p9 = pnand %p1366_p8, %p1360_p5 }
  0x1a   :  { %1192 = vmatmul.mubr.msk.f32.gmra.mrb[2].mxu0 %vm70_vm0, %v45_v17  ;;  %v1098_v36 = vld [vmem:[%s1700_s4 + $0x20] sm:$0xff]  ;;  %v1099_v37 = vld [vmem:[%s1700_s4 + $0x28] sm:$0xff]  ;;  %v1100_v41 = vld [vmem:[%s1700_s4 + $0x30] sm:$0xff] }
  0x1b   :  { %1212 = vmatprep.mubr.msk.f32.mxu0 %vm70_vm0, %v1082_v18  ;;  %v1129_v38 = vld [vmem:[%s1700_s4 + $0x40] sm:$0xff]  ;;  %v1130_v39 = vld [vmem:[%s1700_s4 + $0x48] sm:$0xff]  ;;  %v1131_v42 = vld [vmem:[%s1700_s4 + $0x50] sm:$0xff] }
  0x1c   :  { %390 = vperm.xlu0 %1297, %v1086_v19   ;;  %v195_v43 = vld [vmem:[%s1700_s4 + $0x18] sm:$0xff]  ;;  %v334_v46 = vld [vmem:[%s1701_s5] sm:$0xff]  ;;  %v335_v47 = vld [vmem:[%s1701_s5 + $0x8] sm:$0xff] }
  0x1d   :  { %395 = vperm.xlu1 %1298, %v1087_v20   ;;  %v1101_v44 = vld [vmem:[%s1700_s4 + $0x38] sm:$0xff]  ;;  %v1106_v48 = vld [vmem:[%s1701_s5 + $0x20] sm:$0xff]  ;;  %v1107_v49 = vld [vmem:[%s1701_s5 + $0x28] sm:$0xff] }
  0x1e   :  { %1213 = vmatmul.mubr.msk.f32.vlgmr.msra.gmra.mrb[4].mxu0 %vm70_vm0, %v1083_v21  ;;  %v1132_v45 = vld [vmem:[%s1700_s4 + $0x58] sm:$0xff]  ;;  %v1137_v50 = vld [vmem:[%s1701_s5 + $0x40] sm:$0xff]  ;;  %v1138_v51 = vld [vmem:[%s1701_s5 + $0x48] sm:$0xff] }
  0x1f   :  { %1283 = vmatpush3.bf16.msra.mxu0 %v1280_v13  ;;  %1215 = vmatprep.mubr.msk.f32.mxu0 %vm70_vm0, %v1084_v22  ;;  %v336_v52 = vld [vmem:[%s1701_s5 + $0x10] sm:$0xff]  ;;  %v337_v55 = vld [vmem:[%s1701_s5 + $0x18] sm:$0xff]  ;;  %v188_v58 = vld [vmem:[%s1699_s3] sm:$0xff] }
  0x20   :  { %400 = vperm.xlu0 %1297, %v1088_v23   ;;  %v1108_v53 = vld [vmem:[%s1701_s5 + $0x30] sm:$0xff]  ;;  %v1109_v56 = vld [vmem:[%s1701_s5 + $0x38] sm:$0xff]  ;;  %1202 = vmatprep.mubr.msk.f32.mxu1 %vm216_vm1, %v188_v58 }
  0x21   :  { %405 = vperm.xlu1 %1298, %v1089_v24   ;;  %v1139_v54 = vld [vmem:[%s1701_s5 + $0x50] sm:$0xff]  ;;  %v1140_v57 = vld [vmem:[%s1701_s5 + $0x58] sm:$0xff] }
  0x22   :  { %1216 = vmatmul.mubr.msk.f32.gmra.mrb[6].mxu0 %vm70_vm0, %v1085_v25 }
  0x23   :  { %1236 = vmatprep.mubr.msk.f32.mxu0 %vm70_vm0, %v1113_v26 }
  0x24   :  { %730 = vperm.xlu0 %1297, %v1117_v27  }
  0x25   :  { %735 = vperm.xlu1 %1298, %v1118_v28  }
  0x26   :  { %1237 = vmatmul.mubr.msk.f32.vlgmr.msra.gmra.mrb[8].mxu0 %vm70_vm0, %v1114_v29 }
  0x27   :  { %1239 = vmatprep.mubr.msk.f32.mxu0 %vm70_vm0, %v1115_v30 }
  0x28   :  { %740 = vperm.xlu0 %1297, %v1119_v31  }
  0x29   :  { %745 = vperm.xlu1 %1298, %v1120_v32  }
  0x2a   :  { %1240 = vmatmul.mubr.msk.f32.gmra.mrb[10].mxu0 %vm70_vm0, %v1116_v33 }
  0x2c   :  { %198 = vperm.xlu0 %1297, %v192_v34  }
  0x2d   :  { %203 = vperm.xlu1 %1298, %v193_v35  }
  0x30   :  { %537 = vperm.xlu0 %1297, %v1098_v36  }
  0x31   :  { %542 = vperm.xlu1 %1298, %v1099_v37  }
  0x34   :  { %877 = vperm.xlu0 %1297, %v1129_v38  }
  0x35   :  { %882 = vperm.xlu1 %1298, %v1130_v39  }
  0x38   :  { %208 = vperm.xlu0 %1297, %v194_v40  }
  0x39   :  { %547 = vperm.xlu1 %1298, %v1100_v41  }
  0x3c   :  { %887 = vperm.xlu0 %1297, %v1131_v42  }
  0x3d   :  { %213 = vperm.xlu1 %1298, %v195_v43  }
  0x40   :  { %552 = vperm.xlu0 %1297, %v1101_v44  }
  0x41   :  { %892 = vperm.xlu1 %1298, %v1132_v45  }
  0x44   :  { %340 = vperm.xlu0 %1297, %v334_v46  }
  0x45   :  { %345 = vperm.xlu1 %1298, %v335_v47  }
  0x48   :  { %679 = vperm.xlu0 %1297, %v1106_v48  }
  0x49   :  { %684 = vperm.xlu1 %1298, %v1107_v49  }
  0x4c   :  { %1019 = vperm.xlu0 %1297, %v1137_v50  }
  0x4d   :  { %1024 = vperm.xlu1 %1298, %v1138_v51  }
  0x50   :  { %350 = vperm.xlu0 %1297, %v336_v52  }
  0x51   :  { %689 = vperm.xlu1 %1298, %v1108_v53  }
  0x54   :  { %1029 = vperm.xlu0 %1297, %v1139_v54  }
  0x55   :  { %355 = vperm.xlu1 %1298, %v337_v55  }
  0x58   :  { %694 = vperm.xlu0 %1297, %v1109_v56  }
  0x59   :  { %1034 = vperm.xlu1 %1298, %v1140_v57  }
  0x92   :  { %v53_v60 = vpop.permute.xlu0 %52 }
  0x93   :  { %v63_v59 = vpop.permute.xlu1 %62 }
  0x97   :  { %v58_v62 = vpop.permute.xlu0 %57 }
  0x98   :  { %v68_v61 = vpop.permute.xlu1 %67 }
  0x9b   :  { %v391_v4 = vpop.permute.xlu0 %390 }
  0x9c   :  { %v396_v2 = vpop.permute.xlu1 %395 }
  0x9f   :  { %v401_v15 = vpop.permute.xlu0 %400 }
  0xa0   :  { %v406_v12 = vpop.permute.xlu1 %405 }
  0xa3   :  { %v731_v27 = vpop.permute.xlu0 %730 }
  0xa4   :  { %v736_v24 = vpop.permute.xlu1 %735 }
  0xa7   :  { %v741_v50 = vpop.permute.xlu0 %740 }
  0xa8   :  { %v746_v44 = vpop.permute.xlu1 %745 }
  0xe9   :  { %v1190_v63 = vpop.f32.mrb[0].mxu0 }
  0xea   :  { %v155_v0 = vadd.f32 %v1190_v63, %v58_v62  ;;  %v149_v1 = vpop.f32.mrb[1].mxu0 }
  0xeb   :  { %v150_v3 = vadd.f32 %v149_v1, %v53_v60 }
  0xec   :  { %v173_v5 = vmul.f32 0.70710677, %v155_v0  ;;  %v169_v30 = vmul.f32 0.5, %v155_v0 }
  0xed   :  { %v172_v6 = vmul.f32 0.70710677, %v150_v3  ;;  %v1193_v7 = vpop.f32.mrb[2].mxu0  ;;  %v168_v34 = vmul.f32 0.5, %v150_v3 }
  0xee   :  { %1299 = verf.f32 %v173_v5  ;;  %v165_v8 = vadd.f32 %v1193_v7, %v68_v61  ;;  %v159_v9 = vpop.f32.mrb[3].mxu0 }
  0xef   :  { %1301 = verf.f32 %v172_v6  ;;  %v160_v10 = vadd.f32 %v159_v9, %v63_v59  ;;  %v189_v9 = vld [vmem:[%s1699_s3 + $0x8] sm:$0xff] }
  0xf0   :  { %v175_v11 = vmul.f32 0.70710677, %v165_v8  ;;  %v171_v45 = vmul.f32 0.5, %v165_v8 }
  0xf1   :  { %v174_v13 = vmul.f32 0.70710677, %v160_v10  ;;  %v1214_v14 = vpop.f32.mrb[4].mxu0  ;;  %v170_v47 = vmul.f32 0.5, %v160_v10 }
  0xf2   :  { %1303 = verf.f32 %v175_v11  ;;  %v492_v16 = vadd.f32 %v1214_v14, %v396_v2  ;;  %v486_v17 = vpop.f32.mrb[5].mxu0 }
  0xf3   :  { %1305 = verf.f32 %v174_v13  ;;  %v487_v18 = vadd.f32 %v486_v17, %v391_v4  ;;  %v190_v13 = vld [vmem:[%s1699_s3 + $0x10] sm:$0xff] }
  0xf4   :  { %v510_v19 = vmul.f32 0.70710677, %v492_v16  ;;  %v506_v61 = vmul.f32 0.5, %v492_v16 }
  0xf5   :  { %v509_v20 = vmul.f32 0.70710677, %v487_v18  ;;  %v1217_v21 = vpop.f32.mrb[6].mxu0  ;;  %v505_v0 = vmul.f32 0.5, %v487_v18 }
  0xf6   :  { %1307 = verf.f32 %v510_v19  ;;  %v502_v22 = vadd.f32 %v1217_v21, %v406_v12  ;;  %v496_v23 = vpop.f32.mrb[7].mxu0 }
  0xf7   :  { %1309 = verf.f32 %v509_v20  ;;  %v497_v25 = vadd.f32 %v496_v23, %v401_v15  ;;  %v191_v20 = vld [vmem:[%s1699_s3 + $0x18] sm:$0xff] }
  0xf8   :  { %v1300_v26 = vpop.eup %1299  ;;  %v512_v28 = vmul.f32 0.70710677, %v502_v22  ;;  %v508_v7 = vmul.f32 0.5, %v502_v22 }
  0xf9   :  { %v1302_v29 = vpop.eup %1301  ;;  %v511_v31 = vmul.f32 0.70710677, %v497_v25  ;;  %v1238_v32 = vpop.f32.mrb[8].mxu0  ;;  %v181_v33 = vadd.f32 1.0, %v1300_v26  ;;  %v507_v10 = vmul.f32 0.5, %v497_v25 }
  0xfa   :  { %1311 = verf.f32 %v512_v28  ;;  %v832_v35 = vadd.f32 %v1238_v32, %v736_v24  ;;  %v826_v36 = vpop.f32.mrb[9].mxu0  ;;  %v180_v37 = vadd.f32 1.0, %v1302_v29  ;;  %v1094_v24 = vld [vmem:[%s1699_s3 + $0x20] sm:$0xff] }
  0xfb   :  { %1313 = verf.f32 %v511_v31  ;;  %v827_v38 = vadd.f32 %v826_v36, %v731_v27  ;;  %v185_v39 = vmul.f32 %v181_v33, %v169_v30  ;;  %v1095_v31 = vld [vmem:[%s1699_s3 + $0x28] sm:$0xff] }
  0xfc   :  { %v1304_v40 = vpop.eup %1303  ;;  %v850_v41 = vmul.f32 0.70710677, %v832_v35  ;;  %v184_v42 = vmul.f32 %v180_v37, %v168_v34  ;;  %v846_v18 = vmul.f32 0.5, %v832_v35  ;;  %v1096_v35 = vld [vmem:[%s1699_s3 + $0x30] sm:$0xff] }
  0xfd   :  { %v1306_v43 = vpop.eup %1305  ;;  %v183_v46 = vadd.f32 1.0, %v1304_v40  ;;  %v849_v48 = vmul.f32 0.70710677, %v827_v38  ;;  %v1241_v49 = vpop.f32.mrb[10].mxu0  ;;  %v845_v21 = vmul.f32 0.5, %v827_v38  ;;  %v1097_v38 = vld [vmem:[%s1699_s3 + $0x38] sm:$0xff] }
  0xfe   :  { %v182_v51 = vadd.f32 1.0, %v1306_v43  ;;  %1315 = verf.f32 %v850_v41  ;;  %v842_v52 = vadd.f32 %v1241_v49, %v746_v44  ;;  %v836_v53 = vpop.f32.mrb[11].mxu0  ;;  %v1260_v54 = vpack.c.bf16 %v185_v39, %v184_v42  ;;  %v1125_v40 = vld [vmem:[%s1699_s3 + $0x40] sm:$0xff]  ;;  %v1126_v41 = vld [vmem:[%s1699_s3 + $0x48] sm:$0xff]  ;;  %v1127_v42 = vld [vmem:[%s1699_s3 + $0x50] sm:$0xff]  ;;  %v204_v44 = vpop.permute.xlu1 %203 }
  0xff   :  { %v187_v55 = vmul.f32 %v183_v46, %v171_v45  ;;  %1317 = verf.f32 %v849_v48  ;;  %v837_v56 = vadd.f32 %v836_v53, %v741_v50  ;;  %v1128_v43 = vld [vmem:[%s1699_s3 + $0x58] sm:$0xff]  ;;  %v199_v45 = vpop.permute.xlu0 %198  ;;  %s1679_s3 = sld [smem:[#allocation2]] }
 0x100   :  { %v1308_v57 = vpop.eup %1307  ;;  %v186_v58 = vmul.f32 %v182_v51, %v170_v47  ;;  %v852_v59 = vmul.f32 0.70710677, %v842_v52  ;;  %1261 = vmatprep.subr.bf16.mxu1 %v1260_v54  ;;  %v848_v29 = vmul.f32 0.5, %v842_v52 }
 0x101   :  { %v1310_v60 = vpop.eup %1309  ;;  %v518_v62 = vadd.f32 1.0, %v1308_v57  ;;  %v851_v63 = vmul.f32 0.70710677, %v837_v56  ;;  %1263 = vmatpush3.bf16.msra.mxu1 %v1260_v54  ;;  %v847_v32 = vmul.f32 0.5, %v837_v56 }
 0x102   :  { %v517_v1 = vadd.f32 1.0, %v1310_v60  ;;  %1319 = verf.f32 %v852_v59  ;;  %v1264_v2 = vpack.c.bf16 %v187_v55, %v186_v58  ;;  %v543_v46 = vpop.permute.xlu1 %542 }
 0x103   :  { %v522_v3 = vmul.f32 %v518_v62, %v506_v61  ;;  %1321 = verf.f32 %v851_v63  ;;  %v538_v47 = vpop.permute.xlu0 %537 }
 0x104   :  { %v1312_v4 = vpop.eup %1311  ;;  %v521_v5 = vmul.f32 %v517_v1, %v505_v0  ;;  %1265 = vmatprep.subr.bf16.mxu1 %v1264_v2 }
 0x105   :  { %v1314_v6 = vpop.eup %1313  ;;  %v520_v8 = vadd.f32 1.0, %v1312_v4  ;;  %1267 = vmatpush3.bf16.msra.mxu1 %v1264_v2 }
 0x106   :  { %v519_v11 = vadd.f32 1.0, %v1314_v6  ;;  %v1272_v12 = vpack.c.bf16 %v522_v3, %v521_v5  ;;  %v883_v48 = vpop.permute.xlu1 %882 }
 0x107   :  { %v524_v14 = vmul.f32 %v520_v8, %v508_v7  ;;  %v878_v49 = vpop.permute.xlu0 %877 }
 0x108   :  { %v1316_v15 = vpop.eup %1315  ;;  %v523_v16 = vmul.f32 %v519_v11, %v507_v10  ;;  %1203 = vmatmul.mubr.msk.f32.vlgmr.msra.gmra.mrb[0].mxu1 %vm216_vm1, %v189_v9  ;;  %1273 = vmatprep.subr.bf16.mxu1 %v1272_v12 }
 0x109   :  { %v1318_v17 = vpop.eup %1317  ;;  %v858_v19 = vadd.f32 1.0, %v1316_v15  ;;  %1275 = vmatpush3.bf16.msra.mxu1 %v1272_v12  ;;  %1205 = vmatprep.mubr.msk.f32.mxu1 %vm216_vm1, %v190_v13 }
 0x10a   :  { %v857_v22 = vadd.f32 1.0, %v1318_v17  ;;  %v1276_v23 = vpack.c.bf16 %v524_v14, %v523_v16  ;;  %v548_v50 = vpop.permute.xlu1 %547 }
 0x10b   :  { %v862_v25 = vmul.f32 %v858_v19, %v846_v18  ;;  %v209_v51 = vpop.permute.xlu0 %208 }
 0x10c   :  { %v1320_v26 = vpop.eup %1319  ;;  %v861_v27 = vmul.f32 %v857_v22, %v845_v21  ;;  %1206 = vmatmul.mubr.msk.f32.gmra.mrb[2].mxu1 %vm216_vm1, %v191_v20  ;;  %1277 = vmatprep.subr.bf16.mxu1 %v1276_v23 }
 0x10d   :  { %v1322_v28 = vpop.eup %1321  ;;  %v860_v30 = vadd.f32 1.0, %v1320_v26  ;;  %1279 = vmatpush3.bf16.msra.mxu1 %v1276_v23  ;;  %1226 = vmatprep.mubr.msk.f32.mxu1 %vm216_vm1, %v1094_v24 }
 0x10e   :  { %v859_v33 = vadd.f32 1.0, %v1322_v28  ;;  %v1284_v34 = vpack.c.bf16 %v862_v25, %v861_v27  ;;  %v214_v52 = vpop.permute.xlu1 %213 }
 0x10f   :  { %v864_v36 = vmul.f32 %v860_v30, %v848_v29  ;;  %v1655_v53 = vpop.permute.xlu0 %887 }
 0x110   :  { %v863_v37 = vmul.f32 %v859_v33, %v847_v32  ;;  %1227 = vmatmul.mubr.msk.f32.vlgmr.msra.gmra.mrb[4].mxu1 %vm216_vm1, %v1095_v31  ;;  %1285 = vmatprep.subr.bf16.mxu1 %v1284_v34 }
 0x111   :  { %1287 = vmatpush3.bf16.msra.mxu1 %v1284_v34  ;;  %1229 = vmatprep.mubr.msk.f32.mxu1 %vm216_vm1, %v1096_v35 }
 0x112   :  { %v1288_v39 = vpack.c.bf16 %v864_v36, %v863_v37  ;;  %v1657_v54 = vpop.permute.xlu1 %892 }
 0x113   :  { %v553_v55 = vpop.permute.xlu0 %552 }
 0x114   :  { %1230 = vmatmul.mubr.msk.f32.gmra.mrb[6].mxu1 %vm216_vm1, %v1097_v38  ;;  %1289 = vmatprep.subr.bf16.mxu1 %v1288_v39 }
 0x115   :  { %1291 = vmatpush3.bf16.msra.mxu1 %v1288_v39  ;;  %1250 = vmatprep.mubr.msk.f32.mxu1 %vm216_vm1, %v1125_v40 }
 0x116   :  { %v346_v59 = vpop.permute.xlu1 %345 }
 0x117   :  { %v341_v62 = vpop.permute.xlu0 %340 }
 0x118   :  { %1251 = vmatmul.mubr.msk.f32.vlgmr.msra.gmra.mrb[8].mxu1 %vm216_vm1, %v1126_v41 }
 0x119   :  { %1253 = vmatprep.mubr.msk.f32.mxu1 %vm216_vm1, %v1127_v42 }
 0x11a   :  { %v1659_v5 = vpop.permute.xlu1 %684 }
 0x11b   :  { %v1661_v10 = vpop.permute.xlu0 %679 }
 0x11c   :  { %1254 = vmatmul.mubr.msk.f32.gmra.mrb[10].mxu1 %vm216_vm1, %v1128_v43 }
 0x11e   :  { %v1665_v17 = vpop.permute.xlu1 %1024 }
 0x11f   :  { %v1670_v22 = vpop.permute.xlu0 %1019 }
 0x122   :  { %v690_v38 = vpop.permute.xlu1 %689 }
 0x1db   :  { %v1204_v56 = vpop.f32.mrb[0].mxu1 }
 0x1dc   :  { %v301_v57 = vadd.f32 %v1204_v56, %v204_v44  ;;  %v295_v58 = vpop.f32.mrb[1].mxu1 }
 0x1dd   :  { %v296_v60 = vadd.f32 %v295_v58, %v199_v45 }
 0x1de   :  { %v319_v61 = vmul.f32 0.70710677, %v301_v57  ;;  %v315_v23 = vmul.f32 0.5, %v301_v57 }
 0x1df   :  { %v318_v63 = vmul.f32 0.70710677, %v296_v60  ;;  %v1207_v0 = vpop.f32.mrb[2].mxu1  ;;  %v314_v27 = vmul.f32 0.5, %v296_v60 }
 0x1e0   :  { %1323 = verf.f32 %v319_v61  ;;  %v311_v1 = vadd.f32 %v1207_v0, %v214_v52  ;;  %v305_v2 = vpop.f32.mrb[3].mxu1  ;;  %v356_v0 = vpop.permute.xlu1 %355 }
 0x1e1   :  { %1325 = verf.f32 %v318_v63  ;;  %v306_v3 = vadd.f32 %v305_v2, %v209_v51 }
 0x1e2   :  { %v321_v4 = vmul.f32 0.70710677, %v311_v1  ;;  %v317_v35 = vmul.f32 0.5, %v311_v1 }
 0x1e3   :  { %v320_v6 = vmul.f32 0.70710677, %v306_v3  ;;  %v1228_v7 = vpop.f32.mrb[4].mxu1  ;;  %v316_v41 = vmul.f32 0.5, %v306_v3 }
 0x1e4   :  { %1327 = verf.f32 %v321_v4  ;;  %v639_v8 = vadd.f32 %v1228_v7, %v543_v46  ;;  %v633_v9 = vpop.f32.mrb[5].mxu1 }
 0x1e5   :  { %1329 = verf.f32 %v320_v6  ;;  %v634_v11 = vadd.f32 %v633_v9, %v538_v47 }
 0x1e6   :  { %v657_v12 = vmul.f32 0.70710677, %v639_v8  ;;  %v653_v58 = vmul.f32 0.5, %v639_v8 }
 0x1e7   :  { %v656_v13 = vmul.f32 0.70710677, %v634_v11  ;;  %v1231_v14 = vpop.f32.mrb[6].mxu1 }
 0x1e8   :  { %1331 = verf.f32 %v657_v12  ;;  %v1663_v15 = vadd.f32 %v1231_v14, %v553_v55  ;;  %v643_v16 = vpop.f32.mrb[7].mxu1 }
 0x1e9   :  { %1333 = verf.f32 %v656_v13  ;;  %v1667_v18 = vadd.f32 %v643_v16, %v548_v50 }
 0x1ea   :  { %v1324_v19 = vpop.eup %1323  ;;  %v659_v20 = vmul.f32 0.70710677, %v1663_v15  ;;  %v655_v9 = vmul.f32 0.5, %v1663_v15 }
 0x1eb   :  { %v1326_v21 = vpop.eup %1325  ;;  %v327_v24 = vadd.f32 1.0, %v1324_v19  ;;  %v658_v25 = vmul.f32 0.70710677, %v1667_v18  ;;  %v1252_v26 = vpop.f32.mrb[8].mxu1 }
 0x1ec   :  { %v326_v28 = vadd.f32 1.0, %v1326_v21  ;;  %1335 = verf.f32 %v659_v20  ;;  %v979_v29 = vadd.f32 %v1252_v26, %v883_v48  ;;  %v973_v30 = vpop.f32.mrb[9].mxu1  ;;  %v351_v48 = vpop.permute.xlu0 %350 }
 0x1ed   :  { %v331_v31 = vmul.f32 %v327_v24, %v315_v23  ;;  %1337 = verf.f32 %v658_v25  ;;  %v974_v32 = vadd.f32 %v973_v30, %v878_v49 }
 0x1ee   :  { %v1328_v33 = vpop.eup %1327  ;;  %v330_v34 = vmul.f32 %v326_v28, %v314_v27  ;;  %v997_v36 = vmul.f32 0.70710677, %v979_v29  ;;  %v993_v25 = vmul.f32 0.5, %v979_v29 }
 0x1ef   :  { %v1330_v37 = vpop.eup %1329  ;;  %v359_v39 = vmul.f32 %v346_v59, %v331_v31  ;;  %v329_v40 = vadd.f32 1.0, %v1328_v33  ;;  %v996_v42 = vmul.f32 0.70710677, %v974_v32  ;;  %v1255_v43 = vpop.f32.mrb[10].mxu1  ;;  %v992_v15 = vmul.f32 0.5, %v974_v32 }
 0x1f0   :  { %v358_v44 = vmul.f32 %v341_v62, %v330_v34  ;;  %v328_v45 = vadd.f32 1.0, %v1330_v37  ;;  %1339 = verf.f32 %v997_v36  ;;  %v989_v46 = vadd.f32 %v1255_v43, %v1657_v54  ;;  %v983_v47 = vpop.f32.mrb[11].mxu1  ;;  %v1030_v6 = vpop.permute.xlu0 %1029 }
 0x1f1   :  { %1341 = verf.f32 %v996_v42  ;;  %v984_v49 = vadd.f32 %v983_v47, %v1655_v53  ;;  %v333_v52 = vmul.f32 %v329_v40, %v317_v35  ;;  %v652_v62 = vmul.f32 0.5, %v634_v11 }
 0x1f2   :  { %v1332_v50 = vpop.eup %1331  ;;  %v362_v51 = vadd.f32 %v359_v39, %v358_v44  ;;  %v332_v55 = vmul.f32 %v328_v45, %v316_v41  ;;  %v999_v56 = vmul.f32 0.70710677, %v989_v46  ;;  %v654_v11 = vmul.f32 0.5, %v1667_v18 }
 0x1f3   :  { %v1334_v57 = vpop.eup %1333  ;;  %v665_v59 = vadd.f32 1.0, %v1332_v50  ;;  %v998_v60 = vmul.f32 0.70710677, %v984_v49  ;;  %v361_v2 = vmul.f32 %v356_v0, %v333_v52  ;;  %v995_v39 = vmul.f32 0.5, %v989_v46 }
 0x1f4   :  { %v360_v61 = vmul.f32 %v351_v48, %v332_v55  ;;  %v664_v63 = vadd.f32 1.0, %v1334_v57  ;;  %1343 = verf.f32 %v999_v56  ;;  %v695_v30 = vpop.permute.xlu0 %694  ;;  %v994_v40 = vmul.f32 0.5, %v984_v49  ;;  %v1035_v56 = vpop.permute.xlu1 %1034 }
 0x1f5   :  { %v669_v54 = vmul.f32 %v665_v59, %v653_v58  ;;  %1345 = verf.f32 %v998_v60  ;;  %v372_v50 = vstv %s1679_s3 }
 0x1f6   :  { %v1336_v1 = vpop.eup %1335  ;;  %v363_v3 = vadd.f32 %v362_v51, %v360_v61  ;;  %v668_v53 = vmul.f32 %v664_v63, %v652_v62  ;;  %v711_v61 = vstv %s1110_s27 }
 0x1f7   :  { %v1338_v4 = vpop.eup %1337  ;;  %v698_v7 = vmul.f32 %v1659_v5, %v669_v54  ;;  %v667_v8 = vadd.f32 1.0, %v1336_v1 }
 0x1f8   :  { %v364_v12 = vadd.f32 %v363_v3, %v361_v2  ;;  %v697_v13 = vmul.f32 %v1661_v10, %v668_v53  ;;  %v666_v14 = vadd.f32 1.0, %v1338_v4  ;;  %v1051_v3 = vstv %s1141_s28 }
 0x1f9   :  { %v671_v21 = vmul.f32 %v667_v8, %v655_v9 }
 0x1fa   :  { %v1340_v16 = vpop.eup %1339  ;;  %v365_v19 = vrot.slane %v364_v12, 4  ;;  %v701_v20 = vadd.f32 %v698_v7, %v697_v13  ;;  %v670_v23 = vmul.f32 %v666_v14, %v654_v11 }
 0x1fb   :  { %v1342_v24 = vpop.eup %1341  ;;  %v1005_v26 = vadd.f32 1.0, %v1340_v16  ;;  %v700_v18 = vmul.f32 %v695_v30, %v671_v21 }
 0x1fc   :  { %v366_v5 = vadd.f32 %v365_v19, %v364_v12  ;;  %v699_v27 = vmul.f32 %v690_v38, %v670_v23  ;;  %v1004_v28 = vadd.f32 1.0, %v1342_v24 }
 0x1fd   :  { %v1009_v31 = vmul.f32 %v1005_v26, %v993_v25 }
 0x1fe   :  { %v1344_v10 = vpop.eup %1343  ;;  %v367_v33 = vrot.slane %v366_v5, 2  ;;  %v702_v34 = vadd.f32 %v701_v20, %v699_v27  ;;  %v1008_v35 = vmul.f32 %v1004_v28, %v992_v15 }
 0x1ff   :  { %v1346_v36 = vpop.eup %1345  ;;  %v1038_v37 = vmul.f32 %v1665_v17, %v1009_v31  ;;  %v1007_v29 = vadd.f32 1.0, %v1344_v10 }
 0x200   :  { %v703_v41 = vadd.f32 %v702_v34, %v700_v18  ;;  %v1037_v42 = vmul.f32 %v1670_v22, %v1008_v35  ;;  %v1006_v38 = vadd.f32 1.0, %v1346_v36  ;;  %v368_v32 = vadd.f32 %v367_v33, %v366_v5 }
 0x201   :  { %v1011_v43 = vmul.f32 %v1007_v29, %v995_v39 }
 0x202   :  { %v704_v44 = vrot.slane %v703_v41, 4  ;;  %v1041_v45 = vadd.f32 %v1038_v37, %v1037_v42  ;;  %v1010_v47 = vmul.f32 %v1006_v38, %v994_v40  ;;  %v369_v48 = vrot.slane %v368_v32, 1 }
 0x203   :  { %v1040_v46 = vmul.f32 %v1035_v56, %v1011_v43 }
 0x204   :  { %v705_v51 = vadd.f32 %v704_v44, %v703_v41  ;;  %v1039_v52 = vmul.f32 %v1030_v6, %v1010_v47  ;;  %v370_v55 = vadd.f32 %v369_v48, %v368_v32 }
 0x206   :  { %v706_v17 = vrot.slane %v705_v51, 2  ;;  %v1042_v57 = vadd.f32 %v1041_v45, %v1039_v52  ;;  %v373_v49 = vadd.f32 %v372_v50, %v370_v55 }
 0x208   :  { %v1043_v58 = vadd.f32 %v1042_v57, %v1040_v46  ;;  %374 = vst [vmem:[#allocation5] sm:$0x1] %v373_v49  ;;  %v707_v22 = vadd.f32 %v706_v17, %v705_v51 }
 0x20a   :  { %v1044_v59 = vrot.slane %v1043_v58, 4  ;;  %v708_v60 = vrot.slane %v707_v22, 1 }
 0x20c   :  { %v1045_v62 = vadd.f32 %v1044_v59, %v1043_v58  ;;  %v709_v63 = vadd.f32 %v708_v60, %v707_v22 }
 0x20e   :  { %v1046_v0 = vrot.slane %v1045_v62, 2  ;;  %v712_v54 = vadd.f32 %v711_v61, %v709_v63 }
 0x210   :  { %714 = vst [vmem:[#allocation5 + $0x1] sm:$0x1] %v712_v54  ;;  %v1047_v1 = vadd.f32 %v1046_v0, %v1045_v62 }
 0x212   :  { %v1048_v2 = vrot.slane %v1047_v1, 1 }
 0x214   :  { %v1049_v53 = vadd.f32 %v1048_v2, %v1047_v1 }
 0x216   :  { %v1052_v4 = vadd.f32 %v1051_v3, %v1049_v53 }
 0x218   :  { %1054 = vst [vmem:[#allocation5 + $0x2] sm:$0x1] %v1052_v4 }
 0x219   :  { %1370 = shalt.err (!%p1367_p9)
}
 0x21a   :  { %s1371_s10 = scalar_lea.hbm %s1703_s7, 48 }
 0x21b   :  { %p1372_p10 = scmp.ne.s32.totalorder %s1703_s7, %s1371_s10  ;;  %p1375_p11 = scmp.lt.u32.totalorder %s1371_s10, %s1703_s7 }
 0x21d   :  { %p1377_p12 = pnand %p1375_p11, %p1372_p10 }
 0x21f   :  { %1380 = shalt.err (!%p1377_p12)
}
 0x220   :  { %s1388_s15 = smov 16   ;;  %s1389_s16 = smov 1  }
 0x221   :  { %1066 = dma.vmem_to_hbm [thread:$0]  %s1061_s30, 48, %s1703_s7, [#allocation3], %s1388_s15, %s1388_s15, %s1389_s16  }
 0x222   :  { %1383 = dma.done.wait [#allocation3], 48  }
 0x223   :  { %1384 = vsyncadd [#allocation3], 4294967248 }
 0x224   :  { %1070 = vsyncpa [#allocation3], 1 }
 0x225   :  { %1071 = vsyncpa [#allocation4], 1 }

</bundles_post_ra>
